<compile_context>
chip_gen: v5e
topology: v5e:2x2
jax: 0.10.0
libtpu: 0.0.40
codegen_flags: <defaults>
</compile_context>

<pallas_src>
import numpy as np
import jax
import jax.numpy as jnp
from jax.experimental import pallas as pl
from jax.experimental.pallas import tpu as pltpu


def make_gaussian_kernel(k_size=5, sigma=1.0):
    """Matches Communication.init_gaussian_filter exactly."""
    center = k_size // 2
    x, y = np.mgrid[0 - center:k_size - center, 0 - center:k_size - center]
    gk = 1.0 / (2.0 * np.pi * sigma) * np.exp(
        -(np.square(x) + np.square(y)) / (2.0 * np.square(sigma)))
    return gk.astype(np.float32)


def _conv_matrix(gk, H, W):
    """Static (H*W, H*W) matrix G such that (m_flat @ G) == zero-padded 'same'
    2D convolution of m with gk.  Built once at trace time from the exact
    gaussian weights (no separable re-derivation -> bit-identical taps)."""
    k = gk.shape[0]
    pad = k // 2
    G = np.zeros((H * W, H * W), np.float32)
    for i in range(H):
        for dy in range(k):
            kk = i + dy - pad
            if not (0 <= kk < H):
                continue
            for j in range(W):
                for dx in range(k):
                    ll = j + dx - pad
                    if not (0 <= ll < W):
                        continue
                    G[kk * W + ll, i * W + j] = gk[dy, dx]
    return G


def _build_kernel(threshold, smooth):
    """Kernel over one block of agents.

    refs (smooth=True):  conf (C, BL, HW), G (HW, HW), ind (BL, 1)
                         -> mask (BL, HW), sums (BL, 1)
    """

    def finish(cm, ind_ref, mask_ref, sum_ref):
        if threshold:  # truthiness on purpose: mirrors `elif self.threshold:`
            mask = jnp.where(cm > jnp.float32(threshold),
                             jnp.float32(1.0), jnp.float32(0.0))
        else:
            mask = jnp.ones_like(cm)
        # communication-rate contribution is computed BEFORE the first-agent
        # override, exactly like the PyTorch module.
        sum_ref[...] = jnp.sum(mask, axis=-1, keepdims=True)
        # force first agent of each batch element to all-ones (static indicator)
        mask_ref[...] = jnp.maximum(mask, ind_ref[...])

    if smooth:
        def kernel(conf_ref, g_ref, ind_ref, mask_ref, sum_ref):
            x = conf_ref[...]                              # (C, BL, HW) f32
            m = jax.nn.sigmoid(jnp.max(x, axis=0))         # max first (monotonic)
            cm = jnp.dot(m, g_ref[...],
                         preferred_element_type=jnp.float32)   # MXU conv
            finish(cm, ind_ref, mask_ref, sum_ref)
    else:
        def kernel(conf_ref, ind_ref, mask_ref, sum_ref):
            x = conf_ref[...]
            cm = jax.nn.sigmoid(jnp.max(x, axis=0))
            finish(cm, ind_ref, mask_ref, sum_ref)

    return kernel


def communication_forward(batch_confidence_maps, B, *, threshold, gk, smooth,
                          agents_per_block=8):
    assert len(batch_confidence_maps) == B
    Ls = [int(c.shape[0]) for c in batch_confidence_maps]
    _, C, H, W = batch_confidence_maps[0].shape
    HW = H * W
    N = sum(Ls)

    BL = agents_per_block                       # multiple of 8 (sublane tiling)
    N_pad = max(BL, ((N + BL - 1) // BL) * BL)

    # concatenate all batches along the agent axis, flatten spatial -> lanes
    conf = jnp.concatenate(
        [c.reshape(-1, C, HW) for c in batch_confidence_maps], axis=0)
    if N_pad != N:
        conf = jnp.pad(conf, ((0, N_pad - N), (0, 0), (0, 0)))
    conf_t = jnp.transpose(conf, (1, 0, 2))     # (C, N_pad, HW) layout plumbing

    # static first-agent indicator (one per batch element)
    offsets = np.cumsum([0] + Ls[:-1]).tolist()
    ind_np = np.zeros((N_pad, 1), np.float32)
    for off in offsets:
        ind_np[off, 0] = 1.0
    ind = jnp.asarray(ind_np)

    kernel = _build_kernel(threshold, smooth)
    grid = (N_pad // BL,)

    in_specs = [pl.BlockSpec((C, BL, HW), lambda i: (0, i, 0))]
    args = [conf_t]
    if smooth:
        G = jnp.asarray(_conv_matrix(gk, H, W))
        in_specs.append(pl.BlockSpec((HW, HW), lambda i: (0, 0)))
        args.append(G)
    in_specs.append(pl.BlockSpec((BL, 1), lambda i: (i, 0)))
    args.append(ind)

    masks_flat, sums = pl.pallas_call(
        kernel,
        out_shape=(jax.ShapeDtypeStruct((N_pad, HW), jnp.float32),
                   jax.ShapeDtypeStruct((N_pad, 1), jnp.float32)),
        grid=grid,
        in_specs=in_specs,
        out_specs=(pl.BlockSpec((BL, HW), lambda i: (i, 0)),
                   pl.BlockSpec((BL, 1), lambda i: (i, 0))),
        compiler_params=pltpu.CompilerParams(
            dimension_semantics=("parallel",)),
    )(*args)

    # per-batch communication rate from the pre-override per-agent sums
    sums = sums[:, 0]
    rates = [jnp.sum(sums[off:off + L]) / (L * H * W)
             for off, L in zip(offsets, Ls)]
    communication_rate = sum(rates) / B

    communication_masks = masks_flat[:N].reshape(N, 1, H, W)
    return communication_masks, communication_rate


def _reference(batch_confidence_maps, B, threshold, gk):
    """Plain numpy reference mirroring the PyTorch eval path."""
    masks_all, rates = [], []
    k = gk.shape[0]
    pad = k // 2
    for b in range(B):
        conf = np.asarray(batch_confidence_maps[b], dtype=np.float32)
        L, C, H, W = conf.shape
        s = 1.0 / (1.0 + np.exp(-conf))
        m = s.max(axis=1, keepdims=True)                       # (L,1,H,W)
        padded = np.pad(m, ((0, 0), (0, 0), (pad, pad), (pad, pad)))
        cm = np.zeros_like(m)
        for dy in range(k):
            for dx in range(k):
                cm += gk[dy, dx] * padded[:, :, dy:dy + H, dx:dx + W]
        mask = (cm > threshold).astype(np.float32)
        rate = mask.sum() / (L * H * W)
        mask[0] = 1.0
        masks_all.append(mask)
        rates.append(rate)
    return np.concatenate(masks_all, axis=0), sum(rates) / B


if __name__ == "__main__":
    key = jax.random.PRNGKey(0)

    # args = {'threshold': 0.01, 'gaussian_smooth': {'k_size': 5, 'c_sigma': 1.0}}
    threshold = 0.01
    k_size, c_sigma = 5, 1.0
    gk = make_gaussian_kernel(k_size, c_sigma)

    B = 2
    C, H, W = 4, 16, 16
    Ls = [2, 3]   # number of agents per batch element

    batch_confidence_maps = []
    for L in Ls:
        key, sub = jax.random.split(key)
        batch_confidence_maps.append(
            jax.random.normal(sub, (L, C, H, W), dtype=jnp.float32))

    masks, rate = communication_forward(
        batch_confidence_maps, B, threshold=threshold, gk=gk, smooth=True)
    masks, rate = jax.block_until_ready((masks, rate))

    # lightweight correctness check against a numpy reference
    ref_masks, ref_rate = _reference(batch_confidence_maps, B, threshold, gk)
    assert masks.shape == (sum(Ls), 1, H, W)
    assert np.allclose(np.asarray(masks), ref_masks, atol=1e-5)
    assert np.allclose(float(rate), ref_rate, atol=1e-5)

    print("KERNEL_OK")
</pallas_src>

<mosaic_0001>
module attributes {stable_mosaic.version = 11 : i64} {
  func.func @kernel(%arg0: i32, %arg1: memref<4x8x256xf32, #tpu.memory_space<vmem>>, %arg2: memref<256x256xf32, #tpu.memory_space<vmem>>, %arg3: memref<8x1xf32, #tpu.memory_space<vmem>>, %arg4: memref<8x256xf32, #tpu.memory_space<vmem>>, %arg5: memref<8x1xf32, #tpu.memory_space<vmem>>) attributes {dimension_semantics = [#tpu.dimension_semantics<parallel>], iteration_bounds = array<i64: 1>, scalar_prefetch = 0 : i64, scratch_operands = 0 : i64, tpu.core_type = #tpu.core_type<tc>, window_params = [{transform_indices = @transform_0, window_bounds = array<i64: 4, 8, 256>}, {pipeline_mode = #tpu.pipeline_mode<synchronous>, transform_indices = @transform_1, window_bounds = array<i64: 256, 256>}, {transform_indices = @transform_2, window_bounds = array<i64: 8, 1>}, {transform_indices = @transform_3, window_bounds = array<i64: 8, 256>}, {transform_indices = @transform_4, window_bounds = array<i64: 8, 1>}]} {
    %c0 = arith.constant 0 : index
    %c0_0 = arith.constant 0 : index
    %c0_1 = arith.constant 0 : index
    %0 = vector.load %arg1[%c0, %c0_0, %c0_1] : memref<4x8x256xf32, #tpu.memory_space<vmem>>, vector<4x8x256xf32>
    %cst = arith.constant dense<0xFF800000> : vector<8x256xf32>
    %1 = vector.multi_reduction <maximumf>, %0, %cst [0] : vector<4x8x256xf32> to vector<8x256xf32>
    %2 = arith.negf %1 : vector<8x256xf32>
    %3 = math.exp %2 : vector<8x256xf32>
    %cst_2 = arith.constant 1.000000e+00 : f32
    %4 = vector.broadcast %cst_2 : f32 to vector<8x256xf32>
    %5 = arith.addf %4, %3 : vector<8x256xf32>
    %6 = arith.divf %4, %5 : vector<8x256xf32>
    %c0_3 = arith.constant 0 : index
    %c0_4 = arith.constant 0 : index
    %7 = vector.load %arg2[%c0_3, %c0_4] : memref<256x256xf32, #tpu.memory_space<vmem>>, vector<256x256xf32>
    %cst_5 = arith.constant dense<0.000000e+00> : vector<8x256xf32>
    %8 = tpu.matmul %6, %7, %cst_5 {dimension_numbers = #tpu.dot_dimension_numbers<[1], [0], [0], [1], [0, 0, 1, 1], [], []>} : vector<8x256xf32>, vector<256x256xf32>, vector<8x256xf32> -> vector<8x256xf32>
    %cst_6 = arith.constant 0.00999999977 : f32
    %9 = vector.broadcast %cst_6 : f32 to vector<8x256xf32>
    %10 = arith.cmpf ogt, %8, %9 : vector<8x256xf32>
    %cst_7 = arith.constant 1.000000e+00 : f32
    %cst_8 = arith.constant 0.000000e+00 : f32
    %11 = vector.broadcast %cst_7 : f32 to vector<8x256xf32>
    %12 = vector.broadcast %cst_8 : f32 to vector<8x256xf32>
    %13 = arith.select %10, %11, %12 : vector<8x256xi1>, vector<8x256xf32>
    %cst_9 = arith.constant dense<0.000000e+00> : vector<8xf32>
    %14 = vector.multi_reduction <add>, %13, %cst_9 [1] : vector<8x256xf32> to vector<8xf32>
    %15 = vector.shape_cast %14 : vector<8xf32> to vector<8x1xf32>
    %c0_10 = arith.constant 0 : index
    %c0_11 = arith.constant 0 : index
    %16 = vector.load %arg5[%c0_10, %c0_11] : memref<8x1xf32, #tpu.memory_space<vmem>>, vector<8x1xf32>
    tpu.vector_store %arg5[%c0_10, %c0_11], %15 {strides = array<i32>} : memref<8x1xf32, #tpu.memory_space<vmem>>, vector<8x1xf32>,
    %c0_12 = arith.constant 0 : index
    %c0_13 = arith.constant 0 : index
    %17 = vector.load %arg3[%c0_12, %c0_13] : memref<8x1xf32, #tpu.memory_space<vmem>>, vector<8x1xf32>
    %18 = vector.broadcast %17 : vector<8x1xf32> to vector<8x256xf32>
    %19 = arith.maximumf %13, %18 : vector<8x256xf32>
    %c0_14 = arith.constant 0 : index
    %c0_15 = arith.constant 0 : index
    %20 = vector.load %arg4[%c0_14, %c0_15] : memref<8x256xf32, #tpu.memory_space<vmem>>, vector<8x256xf32>
    tpu.vector_store %arg4[%c0_14, %c0_15], %19 {strides = array<i32>} : memref<8x256xf32, #tpu.memory_space<vmem>>, vector<8x256xf32>,
    return
  }
  func.func @transform_0(%arg0: i32) -> (i32, i32, i32) {
    %c0_i32 = arith.constant 0 : i32
    %c0_i32_0 = arith.constant 0 : i32
    %c0_i32_1 = arith.constant 0 : i32
    return %c0_i32, %arg0, %c0_i32_0 : i32, i32, i32
  }
  func.func @transform_1(%arg0: i32) -> (i32, i32) {
    %c0_i32 = arith.constant 0 : i32
    %c0_i32_0 = arith.constant 0 : i32
    %c0_i32_1 = arith.constant 0 : i32
    return %c0_i32, %c0_i32_0 : i32, i32
  }
  func.func @transform_2(%arg0: i32) -> (i32, i32) {
    %c0_i32 = arith.constant 0 : i32
    %c0_i32_0 = arith.constant 0 : i32
    return %arg0, %c0_i32 : i32, i32
  }
  func.func @transform_3(%arg0: i32) -> (i32, i32) {
    %c0_i32 = arith.constant 0 : i32
    %c0_i32_0 = arith.constant 0 : i32
    return %arg0, %c0_i32 : i32, i32
  }
  func.func @transform_4(%arg0: i32) -> (i32, i32) {
    %c0_i32 = arith.constant 0 : i32
    %c0_i32_0 = arith.constant 0 : i32
    return %arg0, %c0_i32 : i32, i32
  }
}

</mosaic_0001>

<bundles_post_ra>
// kernel: tpu_custom_call.1
= control target key start
LH: loop header
LB: loop body
LE: loop exit
PB: predicated region body
PF: predicated region fallthrough
CT: control target
= control target key end

     0   :  { %10 = vsyncpa [#allocation3], 0  ;;  %s429_s0 = inlined_call_operand.hbm [shape: f32[4,8,256], index: 0, kind: input, shape index: {}]   ;;  %s430_s1 = inlined_call_operand.hbm [shape: f32[256,256], index: 1, kind: input, shape index: {}]   ;;  %s431_s2 = inlined_call_operand.vmem [shape: f32[8,1], index: 2, kind: input, shape index: {}]   ;;  %s432_s3 = inlined_call_operand.hbm [shape: f32[8,256], index: 3, kind: output, shape index: {0}]   ;;  %s433_s4 = inlined_call_operand.vmem [shape: f32[8,1], index: 4, kind: output, shape index: {1}]  }
   0x1   :  { %11 = vsyncpa [#allocation6], 0 }
   0x2   :  { %12 = vsyncpa [#allocation4], 0  ;;  %s17_s17 = sshll.u32 %s429_s0, 4  ;;  %s382_s18 = smov [#allocation2]   ;;  %s18_s17 = int_to_ptr.hbm [resolvable:$true] %s17_s17 }
   0x3   :  { %s19_s19 = sshll.u32 %s382_s18, 4  ;;  %s30_s22 = sshll.u32 %s430_s1, 4  ;;  %s20_s19 = int_to_ptr.vmem [resolvable:$true] %s19_s19  ;;  %s31_s22 = int_to_ptr.hbm [resolvable:$true] %s30_s22 }
   0x4   :  { %s383_s23 = smov 256   ;;  %s384_s24 = smov 16  }
   0x5   :  { %25 = dma.hbm_to_vmem [thread:$0]  %s18_s17, 1024, %s20_s19, [#allocation3], %s383_s23, %s383_s23, %s384_s24  }
   0x6   :  { %s385_s25 = smov [#allocation5]  }
   0x7   :  { %s32_s26 = sshll.u32 %s385_s25, 4  ;;  %s33_s26 = int_to_ptr.vmem [resolvable:$true] %s32_s26 }
   0x8   :  { %38 = dma.hbm_to_vmem [thread:$0]  %s31_s22, 8192, %s33_s26, [#allocation6], %s383_s23, %s383_s23, %s384_s24  }
   0x9   :  { %376 = dma.done.wait [#allocation3], 1024  }
   0xa   :  { %377 = vsyncadd [#allocation3], 4294966272 }
   0xb   :  { %378 = dma.done.wait [#allocation6], 8192  }
   0xc   :  { %379 = vsyncadd [#allocation6], 4294959104  ;;  %v132_v0 = vld [vmem:[#allocation5 + $0xf8] sm:$0xff]  ;;  %v130_v2 = vld [vmem:[#allocation5 + $0xe8] sm:$0xff]  ;;  %s271_s30 = sshll.u32 %s432_s3, 4  ;;  %vm252_vm10 = vcmask 7168   ;;  %s272_s30 = int_to_ptr.hbm [resolvable:$true] %s271_s30 }
   0xd   :  { %v164_v1 = vld [vmem:[#allocation5 + $0x1f8] sm:$0xff]  ;;  %205 = vmatpush.msra.mxu2 %v132_v0  ;;  %v162_v3 = vld [vmem:[#allocation5 + $0x1e8] sm:$0xff]  ;;  %v131_v6 = vld [vmem:[#allocation5 + $0xf0] sm:$0xff] }
   0xe   :  { %225 = vmatpush.msra.mxu3 %v164_v1  ;;  %v128_v4 = vld [vmem:[#allocation5 + $0xd8] sm:$0xff]  ;;  %v163_v7 = vld [vmem:[#allocation5 + $0x1f0] sm:$0xff]  ;;  %v129_v8 = vld [vmem:[#allocation5 + $0xe0] sm:$0xff]  ;;  %165 = vmatpush.msra.mxu0 %v131_v6 }
   0xf   :  { %v160_v5 = vld [vmem:[#allocation5 + $0x1d8] sm:$0xff]  ;;  %206 = vmatpush.msra.mxu2 %v130_v2  ;;  %v161_v9 = vld [vmem:[#allocation5 + $0x1e0] sm:$0xff]  ;;  %185 = vmatpush.msra.mxu1 %v163_v7  ;;  %v126_v10 = vld [vmem:[#allocation5 + $0xc8] sm:$0xff] }
  0x10   :  { %226 = vmatpush.msra.mxu3 %v162_v3  ;;  %v158_v11 = vld [vmem:[#allocation5 + $0x1c8] sm:$0xff]  ;;  %v127_v12 = vld [vmem:[#allocation5 + $0xd0] sm:$0xff]  ;;  %166 = vmatpush.msra.mxu0 %v129_v8  ;;  %v124_v14 = vld [vmem:[#allocation5 + $0xb8] sm:$0xff] }
  0x11   :  { %207 = vmatpush.msra.mxu2 %v128_v4  ;;  %v159_v13 = vld [vmem:[#allocation5 + $0x1d0] sm:$0xff]  ;;  %186 = vmatpush.msra.mxu1 %v161_v9  ;;  %v156_v15 = vld [vmem:[#allocation5 + $0x1b8] sm:$0xff]  ;;  %v125_v16 = vld [vmem:[#allocation5 + $0xc0] sm:$0xff] }
  0x12   :  { %227 = vmatpush.msra.mxu3 %v160_v5  ;;  %v157_v17 = vld [vmem:[#allocation5 + $0x1c0] sm:$0xff]  ;;  %167 = vmatpush.msra.mxu0 %v127_v12  ;;  %v122_v18 = vld [vmem:[#allocation5 + $0xa8] sm:$0xff]  ;;  %v123_v20 = vld [vmem:[#allocation5 + $0xb0] sm:$0xff] }
  0x13   :  { %208 = vmatpush.msra.mxu2 %v126_v10  ;;  %187 = vmatpush.msra.mxu1 %v159_v13  ;;  %v154_v19 = vld [vmem:[#allocation5 + $0x1a8] sm:$0xff]  ;;  %v155_v21 = vld [vmem:[#allocation5 + $0x1b0] sm:$0xff]  ;;  %v120_v22 = vld [vmem:[#allocation5 + $0x98] sm:$0xff] }
  0x14   :  { %228 = vmatpush.msra.mxu3 %v158_v11  ;;  %168 = vmatpush.msra.mxu0 %v125_v16  ;;  %v152_v23 = vld [vmem:[#allocation5 + $0x198] sm:$0xff]  ;;  %v121_v24 = vld [vmem:[#allocation5 + $0xa0] sm:$0xff]  ;;  %v118_v26 = vld [vmem:[#allocation5 + $0x88] sm:$0xff] }
  0x15   :  { %209 = vmatpush.msra.mxu2 %v124_v14  ;;  %188 = vmatpush.msra.mxu1 %v157_v17  ;;  %v153_v25 = vld [vmem:[#allocation5 + $0x1a0] sm:$0xff]  ;;  %v150_v27 = vld [vmem:[#allocation5 + $0x188] sm:$0xff]  ;;  %v119_v28 = vld [vmem:[#allocation5 + $0x90] sm:$0xff] }
  0x16   :  { %229 = vmatpush.msra.mxu3 %v156_v15  ;;  %169 = vmatpush.msra.mxu0 %v123_v20  ;;  %v151_v29 = vld [vmem:[#allocation5 + $0x190] sm:$0xff]  ;;  %v116_v30 = vld [vmem:[#allocation5 + $0x78] sm:$0xff]  ;;  %v117_v32 = vld [vmem:[#allocation5 + $0x80] sm:$0xff] }
  0x17   :  { %210 = vmatpush.msra.mxu2 %v122_v18  ;;  %189 = vmatpush.msra.mxu1 %v155_v21  ;;  %v148_v31 = vld [vmem:[#allocation5 + $0x178] sm:$0xff]  ;;  %v149_v33 = vld [vmem:[#allocation5 + $0x180] sm:$0xff]  ;;  %v114_v34 = vld [vmem:[#allocation5 + $0x68] sm:$0xff]  ;;  %v386_v18 = vmov 0  }
  0x18   :  { %230 = vmatpush.msra.mxu3 %v154_v19  ;;  %170 = vmatpush.msra.mxu0 %v121_v24  ;;  %v146_v35 = vld [vmem:[#allocation5 + $0x168] sm:$0xff]  ;;  %v112_v36 = vld [vmem:[#allocation5 + $0x58] sm:$0xff]  ;;  %v115_v38 = vld [vmem:[#allocation5 + $0x70] sm:$0xff] }
  0x19   :  { %211 = vmatpush.msra.mxu2 %v120_v22  ;;  %190 = vmatpush.msra.mxu1 %v153_v25  ;;  %v144_v37 = vld [vmem:[#allocation5 + $0x158] sm:$0xff]  ;;  %v147_v39 = vld [vmem:[#allocation5 + $0x170] sm:$0xff]  ;;  %v110_v40 = vld [vmem:[#allocation5 + $0x48] sm:$0xff] }
  0x1a   :  { %231 = vmatpush.msra.mxu3 %v152_v23  ;;  %171 = vmatpush.msra.mxu0 %v119_v28  ;;  %v142_v41 = vld [vmem:[#allocation5 + $0x148] sm:$0xff]  ;;  %v113_v42 = vld [vmem:[#allocation5 + $0x60] sm:$0xff]  ;;  %v111_v44 = vld [vmem:[#allocation5 + $0x50] sm:$0xff] }
  0x1b   :  { %212 = vmatpush.msra.mxu2 %v118_v26  ;;  %191 = vmatpush.msra.mxu1 %v151_v29  ;;  %v145_v43 = vld [vmem:[#allocation5 + $0x160] sm:$0xff]  ;;  %v143_v45 = vld [vmem:[#allocation5 + $0x150] sm:$0xff]  ;;  %v50_v50 = vld [vmem:[#allocation2 + $0x8] sm:$0xff] }
  0x1c   :  { %232 = vmatpush.msra.mxu3 %v150_v27  ;;  %172 = vmatpush.msra.mxu0 %v117_v32  ;;  %v49_v46 = vld [vmem:[#allocation2] sm:$0xff]  ;;  %v51_v47 = vld [vmem:[#allocation2 + $0x10] sm:$0xff]  ;;  %v52_v53 = vld [vmem:[#allocation2 + $0x18] sm:$0xff] }
  0x1d   :  { %213 = vmatpush.msra.mxu2 %v116_v30  ;;  %192 = vmatpush.msra.mxu1 %v149_v33  ;;  %v53_v48 = vld [vmem:[#allocation2 + $0x20] sm:$0xff]  ;;  %v55_v49 = vld [vmem:[#allocation2 + $0x30] sm:$0xff]  ;;  %v54_v54 = vld [vmem:[#allocation2 + $0x28] sm:$0xff] }
  0x1e   :  { %233 = vmatpush.msra.mxu3 %v148_v31  ;;  %173 = vmatpush.msra.mxu0 %v115_v38  ;;  %v57_v51 = vmax.f32 %v49_v46, %v53_v48  ;;  %v58_v52 = vmax.f32 %v51_v47, %v55_v49  ;;  %v56_v55 = vld [vmem:[#allocation2 + $0x38] sm:$0xff]  ;;  %v60_v58 = vmax.f32 %v50_v50, %v54_v54  ;;  %v109_v60 = vld [vmem:[#allocation5 + $0x40] sm:$0xff]  ;;  %v106_v63 = vld [vmem:[#allocation5 + $0x28] sm:$0xff]  ;;  %v387_v46 = vmov 0.0  }
  0x1f   :  { %214 = vmatpush.msra.mxu2 %v114_v34  ;;  %193 = vmatpush.msra.mxu1 %v147_v39  ;;  %v108_v56 = vld [vmem:[#allocation5 + $0x38] sm:$0xff]  ;;  %v61_v59 = vmax.f32 %v52_v53, %v56_v55  ;;  %v141_v61 = vld [vmem:[#allocation5 + $0x140] sm:$0xff]  ;;  %v138_v0 = vld [vmem:[#allocation5 + $0x128] sm:$0xff] }
  0x20   :  { %234 = vmatpush.msra.mxu3 %v146_v35  ;;  %174 = vmatpush.msra.mxu0 %v113_v42  ;;  %v140_v57 = vld [vmem:[#allocation5 + $0x138] sm:$0xff]  ;;  %v59_v62 = vmax.f32 %v57_v51, %v58_v52  ;;  %v107_v2 = vld [vmem:[#allocation5 + $0x30] sm:$0xff]  ;;  %v105_v8 = vld [vmem:[#allocation5 + $0x20] sm:$0xff] }
  0x21   :  { %215 = vmatpush.msra.mxu2 %v112_v36  ;;  %194 = vmatpush.msra.mxu1 %v145_v43  ;;  %v62_v1 = vmax.f32 %v60_v58, %v61_v59  ;;  %v139_v3 = vld [vmem:[#allocation5 + $0x130] sm:$0xff]  ;;  %v104_v5 = vld [vmem:[#allocation5 + $0x18] sm:$0xff]  ;;  %v137_v9 = vld [vmem:[#allocation5 + $0x120] sm:$0xff] }
  0x22   :  { %235 = vmatpush.msra.mxu3 %v144_v37  ;;  %175 = vmatpush.msra.mxu0 %v111_v44  ;;  %v286_v4 = vmul.f32 -1.442695, %v59_v62  ;;  %v136_v6 = vld [vmem:[#allocation5 + $0x118] sm:$0xff]  ;;  %v102_v10 = vld [vmem:[#allocation5 + $0x8] sm:$0xff]  ;;  %v103_v12 = vld [vmem:[#allocation5 + $0x10] sm:$0xff] }
  0x23   :  { %216 = vmatpush.msra.mxu2 %v110_v40  ;;  %195 = vmatpush.msra.mxu1 %v143_v45  ;;  %v287_v7 = vmul.f32 -1.442695, %v62_v1  ;;  %v134_v11 = vld [vmem:[#allocation5 + $0x108] sm:$0xff]  ;;  %v135_v13 = vld [vmem:[#allocation5 + $0x110] sm:$0xff]  ;;  %v101_v14 = vld [vmem:[#allocation5] sm:$0xff] }
  0x24   :  { %236 = vmatpush.msra.mxu3 %v142_v41  ;;  %176 = vmatpush.msra.mxu0 %v109_v60  ;;  %296 = vpow2.f32 %v286_v4  ;;  %v133_v15 = vld [vmem:[#allocation5 + $0x100] sm:$0xff] }
  0x25   :  { %217 = vmatpush.msra.mxu2 %v108_v56  ;;  %196 = vmatpush.msra.mxu1 %v141_v61  ;;  %298 = vpow2.f32 %v287_v7  ;;  %v254_v16 = vld [vmem:[%s431_s2] sm:$0xff]  ;;  %s388_s2 = smov [#allocation7]  }
  0x26   :  { %237 = vmatpush.msra.mxu3 %v140_v57  ;;  %177 = vmatpush.msra.mxu0 %v107_v2  ;;  %s269_s27 = sshll.u32 %s388_s2, 4  ;;  %s270_s27 = int_to_ptr.vmem [resolvable:$true] %s269_s27 }
  0x27   :  { %218 = vmatpush.msra.mxu2 %v106_v63  ;;  %197 = vmatpush.msra.mxu1 %v139_v3 }
  0x28   :  { %238 = vmatpush.msra.mxu3 %v138_v0  ;;  %178 = vmatpush.msra.mxu0 %v105_v8 }
  0x29   :  { %219 = vmatpush.msra.mxu2 %v104_v5  ;;  %198 = vmatpush.msra.mxu1 %v137_v9 }
  0x2a   :  { %239 = vmatpush.msra.mxu3 %v136_v6  ;;  %179 = vmatpush.msra.mxu0 %v103_v12  ;;  %v297_v17 = vpop.eup %296 }
  0x2b   :  { %220 = vmatpush.msra.mxu2 %v102_v10  ;;  %199 = vmatpush.msra.mxu1 %v135_v13  ;;  %v299_v19 = vpop.eup %298  ;;  %v69_v20 = vadd.f32 1.0, %v297_v17 }
  0x2c   :  { %240 = vmatpush.msra.mxu3 %v134_v11  ;;  %295 = vset.pattern.permute.xlu0 %v386_v18  ;;  %v70_v21 = vadd.f32 1.0, %v299_v19 }
  0x2d   :  { %180 = vmatpush.msra.mxu0 %v101_v14  ;;  %200 = vmatpush.msra.mxu1 %v133_v15  ;;  %300 = vrcp.f32 %v69_v20  ;;  %vm76_vm0 = vweird.f32 %v69_v20  ;;  %v82_v25 = vand.u32 2147483648, %v69_v20  ;;  %v80_v28 = vand.u32 2147483647, %v69_v20 }
  0x2e   :  { %257 = vperm.xlu0 %295, %v254_v16   ;;  %302 = vrcp.f32 %v70_v21  ;;  %v97_v29 = vand.u32 2147483648, %v70_v21  ;;  %vm91_vm2 = vweird.f32 %v70_v21  ;;  %v95_v31 = vand.u32 2147483647, %v70_v21 }
  0x2f   :  { %v83_v33 = vor.u32 1.1754944e-38, %v82_v25  ;;  %vm81_vm5 = vcmp.eq.f32.partialorder %v80_v28, 8.507059e+37 }
  0x30   :  { %v98_v36 = vor.u32 1.1754944e-38, %v97_v29  ;;  %vm96_vm7 = vcmp.eq.f32.partialorder %v95_v31, 8.507059e+37 }
  0x33   :  { %v301_v22 = vpop.eup %300 }
  0x34   :  { %v303_v23 = vpop.eup %302  ;;  %v72_v24 = vmul.f32 %v301_v22, %v69_v20  ;;  %vm77_vm1 = vweird.f32 %v301_v22 }
  0x35   :  { %v87_v26 = vmul.f32 %v303_v23, %v70_v21  ;;  %vm92_vm3 = vweird.f32 %v303_v23  ;;  %vm78_vm4 = vmor %vm76_vm0, %vm77_vm1 }
  0x36   :  { %v73_v27 = vsub.f32 1.0, %v72_v24  ;;  %vm93_vm6 = vmor %vm91_vm2, %vm92_vm3 }
  0x37   :  { %v88_v30 = vsub.f32 1.0, %v87_v26 }
  0x38   :  { %v74_v32 = vmul.f32 %v301_v22, %v73_v27 }
  0x39   :  { %v89_v34 = vmul.f32 %v303_v23, %v88_v30 }
  0x3a   :  { %v75_v35 = vadd.f32 %v301_v22, %v74_v32 }
  0x3b   :  { %v90_v37 = vadd.f32 %v303_v23, %v89_v34 }
  0x3c   :  { %v79_v38 = vsel %vm78_vm4, %v301_v22, %v75_v35 }
  0x3d   :  { %v84_v39 = vsel %vm81_vm5, %v83_v33, %v79_v38  ;;  %v94_v40 = vsel %vm93_vm6, %v303_v23, %v90_v37 }
  0x3e   :  { %221 = vmatmul.f32.vlgmr.msra.gmra.mxu2 %v84_v39  ;;  %v99_v41 = vsel %vm96_vm7, %v98_v36, %v94_v40  ;;  %181 = vmatmul.f32.vlgmr.msra.gmra.mxu0 %v84_v39 }
  0x3f   :  { %241 = vmatmul.f32.vlgmr.msra.gmra.mxu3 %v99_v41  ;;  %201 = vmatmul.f32.vlgmr.msra.gmra.mxu1 %v99_v41 }
  0xa0   :  { %v258_v45 = vpop.permute.xlu0 %257 }
  0xbb   :  { %v182_v42 = vpop.f32.mrf.mxu0 }
  0xbc   :  { %v202_v43 = vpop.f32.mrf.mxu1 }
  0xbd   :  { %v203_v44 = vadd.f32 %v202_v43, %v182_v42 }
  0xbf   :  { %vm245_vm8 = vcmp.gt.f32.partialorder %v203_v44, 0.01 }
  0xc0   :  { %v247_v47 = vsel %vm245_vm8, 1.0, %v387_v46 }
  0xc1   :  { %v222_v48 = vpop.f32.mrf.mxu2  ;;  %v260_v49 = vmax.f32 %v247_v47, %v258_v45 }
  0xc2   :  { %v242_v50 = vpop.f32.mrf.mxu3 }
  0xc3   :  { %v243_v51 = vadd.f32 %v242_v50, %v222_v48  ;;  %262 = vst [vmem:[#allocation7] sm:$0xff] %v260_v49 }
  0xc5   :  { %vm246_vm9 = vcmp.gt.f32.partialorder %v243_v51, 0.01 }
  0xc6   :  { %v248_v52 = vsel %vm246_vm9, 1.0, %v387_v46 }
  0xc7   :  { %v261_v53 = vmax.f32 %v248_v52, %v258_v45  ;;  %v249_v54 = vadd.f32 %v248_v52, %v247_v47 }
  0xc9   :  { %263 = vst [vmem:[#allocation7 + $0x8] sm:$0xff] %v261_v53  ;;  %250 = vadd.xlane.f32.xlu0 %v249_v54 }
  0xca   :  { %274 = dma.vmem_to_hbm [thread:$0]  %s270_s27, 256, %s272_s30, [#allocation4]  }
 0x13c   :  { %v251_v55 = vpop.xlane.xlu0 %250 }
 0x13d   :  { %253 = vst.msk [vmem:[%s433_s4] sm:$0xff] %vm252_vm10, %v251_v55 }
 0x13e   :  { %380 = dma.done.wait [#allocation4], 256  }
 0x13f   :  { %381 = vsyncadd [#allocation4], 4294967040 }
 0x140   :  { %283 = vsyncpa [#allocation3], 1 }
 0x141   :  { %284 = vsyncpa [#allocation6], 1 }
 0x142   :  { %285 = vsyncpa [#allocation4], 1 }

</bundles_post_ra>
